<compile_context>
chip_gen: v5e
topology: v5e:2x2
jax: 0.10.0
libtpu: 0.0.40
codegen_flags: <defaults>
</compile_context>

<pallas_src>
import functools

import jax
import jax.numpy as jnp
from jax import lax
from jax.experimental import pallas as pl
from jax.experimental.pallas import tpu as pltpu

_EPS = 1e-8  # torch.nn.CosineSimilarity default eps


def _loss_kvkc_kernel(p1_ref, p2_ref, z1_ref, z2_ref,
                      zd1_ref, zd2_ref, y1_ref, y2_ref,
                      cos_part_ref, ce_part_ref,
                      *, batch, tile_batch, ragged):

    def cos_rows(a, b):
        # Per-row cosine similarity along dim=1 -> (TB, 1).  keepdims keeps the per-row
        # scalars on the sublane axis; rsqrt runs on the EUP slot and the min() preserves
        # torch's per-norm eps clamp (1 / max(||x||, eps)) exactly.
        num = jnp.sum(a * b, axis=1, keepdims=True)
        inv_a = jnp.minimum(lax.rsqrt(jnp.sum(a * a, axis=1, keepdims=True)), 1.0 / _EPS)
        inv_b = jnp.minimum(lax.rsqrt(jnp.sum(b * b, axis=1, keepdims=True)), 1.0 / _EPS)
        return num * inv_a * inv_b

    def nll_rows(z, y):
        # Per-row -log_softmax(z)[y] -> (TB, 1), single shifted pass:
        #   nll = (logsumexp(z - m) + m) - (z[y]) = logsumexp(zm) - zm[y]
        m = jnp.max(z, axis=1, keepdims=True)
        zm = z - m
        lse = jnp.log(jnp.sum(jnp.exp(zm), axis=1, keepdims=True))
        cls = lax.broadcasted_iota(jnp.int32, z.shape, 1)
        zm_y = jnp.sum(jnp.where(cls == y, zm, 0.0), axis=1, keepdims=True)
        return lse - zm_y

    p1 = p1_ref[...].astype(jnp.float32)
    p2 = p2_ref[...].astype(jnp.float32)
    zd1 = zd1_ref[...].astype(jnp.float32)
    zd2 = zd2_ref[...].astype(jnp.float32)
    z1 = z1_ref[...].astype(jnp.float32)
    z2 = z2_ref[...].astype(jnp.float32)
    y1 = y1_ref[...]
    y2 = y2_ref[...]

    cos_tile = cos_rows(p1, zd2) + cos_rows(p2, zd1)   # (TB, 1)
    ce_tile = nll_rows(z1, y1) + nll_rows(z2, y2)      # (TB, 1)

    if ragged:
        # Ragged last block: Pallas re-reads valid rows for the padding, so masking
        # (with a select, never a multiply) only prevents double counting.
        row = (pl.program_id(0) * tile_batch
               + lax.broadcasted_iota(jnp.int32, (tile_batch, 1), 0))
        valid = row < batch
        cos_tile = jnp.where(valid, cos_tile, 0.0)
        ce_tile = jnp.where(valid, ce_tile, 0.0)

    # One full-vreg unmasked store per output per grid step; wrapper reads [:, 0, 0].
    cos_part_ref[...] = jnp.broadcast_to(jnp.sum(cos_tile), cos_part_ref.shape)
    ce_part_ref[...] = jnp.broadcast_to(jnp.sum(ce_tile), ce_part_ref.shape)


def _cdiv(a, b):
    return -(-a // b)


def _vmem_budgets():
    """Generation-aware (stream_budget_bytes, vmem_limit_bytes)."""
    cap = None
    try:
        cap = getattr(pltpu.get_tpu_info(), "vmem_capacity_bytes", None)
    except Exception:
        cap = None
    if not cap:
        return 32 << 20, 48 << 20            # conservative fallback
    if cap >= (96 << 20):                    # 128-MiB parts (v5e / v6e)
        return 80 << 20, 100 << 20
    return 32 << 20, 44 << 20                # 64-MiB parts (v7x)


def _pick_tile_batch(batch, d, c, stream_budget_bytes):
    """Largest tile that fits the stream budget, then balanced against B so the
    ragged last block wastes at most 7 rows of HBM bandwidth."""
    # Live bytes per row across all 8 double-buffered input streams (worst case f32;
    # bf16 callers simply get extra headroom).
    bytes_per_row = 2 * 4 * (4 * d + 2 * c + 2)
    tb_max = max(8, (stream_budget_bytes // bytes_per_row) // 8 * 8)
    if batch <= tb_max:
        return batch                          # single block, no padding at all
    n_tiles = _cdiv(batch, tb_max)
    tb = _cdiv(batch, n_tiles)                # balanced rows per block
    return _cdiv(tb, 8) * 8                   # sublane-aligned


def loss_kvkc(p1, p2, z1, z2, zd1, zd2, y1, y2, *, lam=1.0, forget=True,
              tile_batch=None, stream_budget_bytes=None, vmem_limit_bytes=None):
    """Pallas implementation of LossKVKC.forward.

    Returns (total_loss, cos_similarity, sce) as float32 scalars.
    Embeddings/logits may be float32 or bfloat16 (upcast to f32 in-kernel).
    """
    B, D = p1.shape
    C = z1.shape[1]
    y1 = y1.astype(jnp.int32).reshape(B, 1)
    y2 = y2.astype(jnp.int32).reshape(B, 1)

    default_stream, default_vmem = _vmem_budgets()
    if stream_budget_bytes is None:
        stream_budget_bytes = default_stream
    if vmem_limit_bytes is None:
        vmem_limit_bytes = default_vmem

    tb = tile_batch if tile_batch is not None else _pick_tile_batch(
        B, D, C, stream_budget_bytes)
    tb = min(tb, B)
    n_tiles = pl.cdiv(B, tb)
    ragged = (B % tb) != 0

    emb_spec = pl.BlockSpec((tb, D), lambda i: (i, 0))
    log_spec = pl.BlockSpec((tb, C), lambda i: (i, 0))
    lab_spec = pl.BlockSpec((tb, 1), lambda i: (i, 0))
    part_spec = pl.BlockSpec((1, 8, 128), lambda i: (i, 0, 0))
    part_shape = jax.ShapeDtypeStruct((n_tiles, 8, 128), jnp.float32)

    kernel = functools.partial(
        _loss_kvkc_kernel, batch=B, tile_batch=tb, ragged=ragged)

    cos_parts, ce_parts = pl.pallas_call(
        kernel,
        out_shape=(part_shape, part_shape),
        grid_spec=pltpu.PrefetchScalarGridSpec(
            num_scalar_prefetch=0,
            grid=(n_tiles,),
            in_specs=[emb_spec, emb_spec,       # p1, p2
                      log_spec, log_spec,       # z1, z2
                      emb_spec, emb_spec,       # zd1, zd2
                      lab_spec, lab_spec],      # y1, y2
            out_specs=(part_spec, part_spec)),
        compiler_params=pltpu.CompilerParams(
            # Independent per-block partials -> true "parallel" axis; on v7x megacore
            # this shards the stream over both TensorCores (no effect on v5e/v6e).
            dimension_semantics=("parallel",),
            vmem_limit_bytes=vmem_limit_bytes),
    )(p1, p2, z1, z2, zd1, zd2, y1, y2)

    # Trivial finalize in the wrapper (fold the 0.5 and the mean into one constant).
    inv_b = jnp.float32(0.5 / B)
    cos_mean = jnp.sum(cos_parts[:, 0, 0]) * inv_b
    sce = jnp.sum(ce_parts[:, 0, 0]) * inv_b
    sign = jnp.float32(1.0 if forget else -1.0)   # vaporization vs concentration
    total = sign * cos_mean + jnp.float32(lam) * sce
    return total, cos_mean, sce


# ----------------------------- reference (pure JAX) -----------------------------
def _ref_cos_mean(a, b):
    num = jnp.sum(a * b, axis=1)
    na = jnp.maximum(jnp.linalg.norm(a, axis=1), _EPS)
    nb = jnp.maximum(jnp.linalg.norm(b, axis=1), _EPS)
    return jnp.mean(num / (na * nb))


def _ref_ce(z, y):
    logp = jax.nn.log_softmax(z, axis=1)
    return -jnp.mean(logp[jnp.arange(z.shape[0]), y])


def _ref_loss(p1, p2, z1, z2, zd1, zd2, y1, y2, lam, forget):
    cos = 0.5 * (_ref_cos_mean(p1, zd2) + _ref_cos_mean(p2, zd1))
    sce = 0.5 * (_ref_ce(z1, y1) + _ref_ce(z2, y2))
    sign = 1.0 if forget else -1.0
    return sign * cos + lam * sce, cos, sce


if __name__ == "__main__":
    def make_inputs(B, D, C, key):
        ks = jax.random.split(key, 8)
        p1 = jax.random.normal(ks[0], (B, D), dtype=jnp.float32)
        p2 = jax.random.normal(ks[1], (B, D), dtype=jnp.float32)
        zd1 = jax.random.normal(ks[2], (B, D), dtype=jnp.float32)
        zd2 = jax.random.normal(ks[3], (B, D), dtype=jnp.float32)
        z1 = jax.random.normal(ks[4], (B, C), dtype=jnp.float32)
        z2 = jax.random.normal(ks[5], (B, C), dtype=jnp.float32)
        y1 = jax.random.randint(ks[6], (B,), 0, C, dtype=jnp.int32)
        y2 = jax.random.randint(ks[7], (B,), 0, C, dtype=jnp.int32)
        return p1, p2, z1, z2, zd1, zd2, y1, y2

    # Test 1: small single-tile problem, both forget modes.
    B, D, C = 8, 32, 16
    args = make_inputs(B, D, C, jax.random.PRNGKey(0))
    lam = 0.5
    for forget in (True, False):
        out = loss_kvkc(*args, lam=lam, forget=forget)
        jax.block_until_ready(out)
        ref = _ref_loss(*args, lam=lam, forget=forget)
        for got, want in zip(out, ref):
            assert jnp.allclose(got, want, atol=1e-5, rtol=1e-5), (forget, got, want)

    # Test 2: multi-tile grid with a ragged last tile (exercises the mask + parallel partials).
    B2 = 20
    args2 = make_inputs(B2, D, C, jax.random.PRNGKey(1))
    out2 = loss_kvkc(*args2, lam=1.0, forget=True, tile_batch=8)
    jax.block_until_ready(out2)
    ref2 = _ref_loss(*args2, lam=1.0, forget=True)
    for got, want in zip(out2, ref2):
        assert jnp.allclose(got, want, atol=1e-5, rtol=1e-5), (got, want)

    # Test 3: bf16 embeddings/logits (halves HBM bytes; kernel upcasts to f32 internally).
    args3 = make_inputs(24, D, C, jax.random.PRNGKey(2))
    args3_bf16 = tuple(a.astype(jnp.bfloat16) if a.dtype == jnp.float32 else a
                       for a in args3)
    out3 = loss_kvkc(*args3_bf16, lam=0.7, forget=True, tile_batch=16)
    jax.block_until_ready(out3)
    ref3_inputs = tuple(a.astype(jnp.float32) if a.dtype == jnp.bfloat16 else a
                        for a in args3_bf16)
    ref3 = _ref_loss(*ref3_inputs, lam=0.7, forget=True)
    for got, want in zip(out3, ref3):
        assert jnp.allclose(got, want, atol=1e-4, rtol=1e-4), (got, want)

    print("KERNEL_OK")
</pallas_src>

<mosaic_0001>
module attributes {stable_mosaic.version = 11 : i64} {
  func.func @_loss_kvkc_kernel(%arg0: i32, %arg1: memref<8x32xf32, #tpu.memory_space<vmem>>, %arg2: memref<8x32xf32, #tpu.memory_space<vmem>>, %arg3: memref<8x16xf32, #tpu.memory_space<vmem>>, %arg4: memref<8x16xf32, #tpu.memory_space<vmem>>, %arg5: memref<8x32xf32, #tpu.memory_space<vmem>>, %arg6: memref<8x32xf32, #tpu.memory_space<vmem>>, %arg7: memref<8x1xi32, #tpu.memory_space<vmem>>, %arg8: memref<8x1xi32, #tpu.memory_space<vmem>>, %arg9: memref<1x8x128xf32, #tpu.memory_space<vmem>>, %arg10: memref<1x8x128xf32, #tpu.memory_space<vmem>>) attributes {dimension_semantics = [#tpu.dimension_semantics<parallel>], iteration_bounds = array<i64: 1>, scalar_prefetch = 0 : i64, scratch_operands = 0 : i64, tpu.core_type = #tpu.core_type<tc>, window_params = [{transform_indices = @transform_0, window_bounds = array<i64: 8, 32>}, {transform_indices = @transform_1, window_bounds = array<i64: 8, 32>}, {transform_indices = @transform_2, window_bounds = array<i64: 8, 16>}, {transform_indices = @transform_3, window_bounds = array<i64: 8, 16>}, {transform_indices = @transform_4, window_bounds = array<i64: 8, 32>}, {transform_indices = @transform_5, window_bounds = array<i64: 8, 32>}, {transform_indices = @transform_6, window_bounds = array<i64: 8, 1>}, {transform_indices = @transform_7, window_bounds = array<i64: 8, 1>}, {transform_indices = @transform_8, window_bounds = array<i64: 1, 8, 128>}, {transform_indices = @transform_9, window_bounds = array<i64: 1, 8, 128>}]} {
    %c0 = arith.constant 0 : index
    %c0_0 = arith.constant 0 : index
    %0 = vector.load %arg1[%c0, %c0_0] : memref<8x32xf32, #tpu.memory_space<vmem>>, vector<8x32xf32>
    %c0_1 = arith.constant 0 : index
    %c0_2 = arith.constant 0 : index
    %1 = vector.load %arg2[%c0_1, %c0_2] : memref<8x32xf32, #tpu.memory_space<vmem>>, vector<8x32xf32>
    %c0_3 = arith.constant 0 : index
    %c0_4 = arith.constant 0 : index
    %2 = vector.load %arg5[%c0_3, %c0_4] : memref<8x32xf32, #tpu.memory_space<vmem>>, vector<8x32xf32>
    %c0_5 = arith.constant 0 : index
    %c0_6 = arith.constant 0 : index
    %3 = vector.load %arg6[%c0_5, %c0_6] : memref<8x32xf32, #tpu.memory_space<vmem>>, vector<8x32xf32>
    %c0_7 = arith.constant 0 : index
    %c0_8 = arith.constant 0 : index
    %4 = vector.load %arg3[%c0_7, %c0_8] : memref<8x16xf32, #tpu.memory_space<vmem>>, vector<8x16xf32>
    %c0_9 = arith.constant 0 : index
    %c0_10 = arith.constant 0 : index
    %5 = vector.load %arg4[%c0_9, %c0_10] : memref<8x16xf32, #tpu.memory_space<vmem>>, vector<8x16xf32>
    %c0_11 = arith.constant 0 : index
    %c0_12 = arith.constant 0 : index
    %6 = vector.load %arg7[%c0_11, %c0_12] : memref<8x1xi32, #tpu.memory_space<vmem>>, vector<8x1xi32>
    %c0_13 = arith.constant 0 : index
    %c0_14 = arith.constant 0 : index
    %7 = vector.load %arg8[%c0_13, %c0_14] : memref<8x1xi32, #tpu.memory_space<vmem>>, vector<8x1xi32>
    %8 = arith.mulf %0, %3 : vector<8x32xf32>
    %cst = arith.constant dense<0.000000e+00> : vector<8xf32>
    %9 = vector.multi_reduction <add>, %8, %cst [1] : vector<8x32xf32> to vector<8xf32>
    %10 = vector.shape_cast %9 : vector<8xf32> to vector<8x1xf32>
    %11 = arith.mulf %0, %0 : vector<8x32xf32>
    %cst_15 = arith.constant dense<0.000000e+00> : vector<8xf32>
    %12 = vector.multi_reduction <add>, %11, %cst_15 [1] : vector<8x32xf32> to vector<8xf32>
    %13 = vector.shape_cast %12 : vector<8xf32> to vector<8x1xf32>
    %14 = math.rsqrt %13 : vector<8x1xf32>
    %cst_16 = arith.constant 1.000000e+08 : f32
    %15 = vector.broadcast %cst_16 : f32 to vector<8x1xf32>
    %16 = arith.minimumf %14, %15 : vector<8x1xf32>
    %17 = arith.mulf %3, %3 : vector<8x32xf32>
    %cst_17 = arith.constant dense<0.000000e+00> : vector<8xf32>
    %18 = vector.multi_reduction <add>, %17, %cst_17 [1] : vector<8x32xf32> to vector<8xf32>
    %19 = vector.shape_cast %18 : vector<8xf32> to vector<8x1xf32>
    %20 = math.rsqrt %19 : vector<8x1xf32>
    %cst_18 = arith.constant 1.000000e+08 : f32
    %21 = vector.broadcast %cst_18 : f32 to vector<8x1xf32>
    %22 = arith.minimumf %20, %21 : vector<8x1xf32>
    %23 = arith.mulf %10, %16 : vector<8x1xf32>
    %24 = arith.mulf %23, %22 : vector<8x1xf32>
    %25 = arith.mulf %1, %2 : vector<8x32xf32>
    %cst_19 = arith.constant dense<0.000000e+00> : vector<8xf32>
    %26 = vector.multi_reduction <add>, %25, %cst_19 [1] : vector<8x32xf32> to vector<8xf32>
    %27 = vector.shape_cast %26 : vector<8xf32> to vector<8x1xf32>
    %28 = arith.mulf %1, %1 : vector<8x32xf32>
    %cst_20 = arith.constant dense<0.000000e+00> : vector<8xf32>
    %29 = vector.multi_reduction <add>, %28, %cst_20 [1] : vector<8x32xf32> to vector<8xf32>
    %30 = vector.shape_cast %29 : vector<8xf32> to vector<8x1xf32>
    %31 = math.rsqrt %30 : vector<8x1xf32>
    %cst_21 = arith.constant 1.000000e+08 : f32
    %32 = vector.broadcast %cst_21 : f32 to vector<8x1xf32>
    %33 = arith.minimumf %31, %32 : vector<8x1xf32>
    %34 = arith.mulf %2, %2 : vector<8x32xf32>
    %cst_22 = arith.constant dense<0.000000e+00> : vector<8xf32>
    %35 = vector.multi_reduction <add>, %34, %cst_22 [1] : vector<8x32xf32> to vector<8xf32>
    %36 = vector.shape_cast %35 : vector<8xf32> to vector<8x1xf32>
    %37 = math.rsqrt %36 : vector<8x1xf32>
    %cst_23 = arith.constant 1.000000e+08 : f32
    %38 = vector.broadcast %cst_23 : f32 to vector<8x1xf32>
    %39 = arith.minimumf %37, %38 : vector<8x1xf32>
    %40 = arith.mulf %27, %33 : vector<8x1xf32>
    %41 = arith.mulf %40, %39 : vector<8x1xf32>
    %42 = arith.addf %24, %41 : vector<8x1xf32>
    %cst_24 = arith.constant dense<0xFF800000> : vector<8xf32>
    %43 = vector.multi_reduction <maximumf>, %4, %cst_24 [1] : vector<8x16xf32> to vector<8xf32>
    %44 = vector.shape_cast %43 : vector<8xf32> to vector<8x1xf32>
    %45 = vector.broadcast %44 : vector<8x1xf32> to vector<8x16xf32>
    %46 = arith.subf %4, %45 : vector<8x16xf32>
    %47 = math.exp %46 : vector<8x16xf32>
    %cst_25 = arith.constant dense<0.000000e+00> : vector<8xf32>
    %48 = vector.multi_reduction <add>, %47, %cst_25 [1] : vector<8x16xf32> to vector<8xf32>
    %49 = vector.shape_cast %48 : vector<8xf32> to vector<8x1xf32>
    %50 = math.log %49 : vector<8x1xf32>
    %51 = tpu.iota {dimensions = array<i32: 1>} : vector<8x16xi32>
    %52 = vector.broadcast %6 : vector<8x1xi32> to vector<8x16xi32>
    %53 = arith.cmpi eq, %51, %52 : vector<8x16xi32>
    %cst_26 = arith.constant 0.000000e+00 : f32
    %54 = vector.broadcast %cst_26 : f32 to vector<8x16xf32>
    %55 = arith.select %53, %46, %54 : vector<8x16xi1>, vector<8x16xf32>
    %cst_27 = arith.constant dense<0.000000e+00> : vector<8xf32>
    %56 = vector.multi_reduction <add>, %55, %cst_27 [1] : vector<8x16xf32> to vector<8xf32>
    %57 = vector.shape_cast %56 : vector<8xf32> to vector<8x1xf32>
    %58 = arith.subf %50, %57 : vector<8x1xf32>
    %cst_28 = arith.constant dense<0xFF800000> : vector<8xf32>
    %59 = vector.multi_reduction <maximumf>, %5, %cst_28 [1] : vector<8x16xf32> to vector<8xf32>
    %60 = vector.shape_cast %59 : vector<8xf32> to vector<8x1xf32>
    %61 = vector.broadcast %60 : vector<8x1xf32> to vector<8x16xf32>
    %62 = arith.subf %5, %61 : vector<8x16xf32>
    %63 = math.exp %62 : vector<8x16xf32>
    %cst_29 = arith.constant dense<0.000000e+00> : vector<8xf32>
    %64 = vector.multi_reduction <add>, %63, %cst_29 [1] : vector<8x16xf32> to vector<8xf32>
    %65 = vector.shape_cast %64 : vector<8xf32> to vector<8x1xf32>
    %66 = math.log %65 : vector<8x1xf32>
    %67 = tpu.iota {dimensions = array<i32: 1>} : vector<8x16xi32>
    %68 = vector.broadcast %7 : vector<8x1xi32> to vector<8x16xi32>
    %69 = arith.cmpi eq, %67, %68 : vector<8x16xi32>
    %cst_30 = arith.constant 0.000000e+00 : f32
    %70 = vector.broadcast %cst_30 : f32 to vector<8x16xf32>
    %71 = arith.select %69, %62, %70 : vector<8x16xi1>, vector<8x16xf32>
    %cst_31 = arith.constant dense<0.000000e+00> : vector<8xf32>
    %72 = vector.multi_reduction <add>, %71, %cst_31 [1] : vector<8x16xf32> to vector<8xf32>
    %73 = vector.shape_cast %72 : vector<8xf32> to vector<8x1xf32>
    %74 = arith.subf %66, %73 : vector<8x1xf32>
    %75 = arith.addf %58, %74 : vector<8x1xf32>
    %76 = vector.shape_cast %42 : vector<8x1xf32> to vector<1x8x1xf32>
    %cst_32 = arith.constant dense<0.000000e+00> : vector<1xf32>
    %77 = vector.multi_reduction <add>, %76, %cst_32 [1, 2] : vector<1x8x1xf32> to vector<1xf32>
    %78 = vector.shape_cast %77 : vector<1xf32> to vector<1x1x1xf32>
    %79 = vector.extract %78[0, 0, 0] : f32 from vector<1x1x1xf32>
    %80 = vector.broadcast %79 : f32 to vector<1x8x128xf32>
    %c0_33 = arith.constant 0 : index
    %c0_34 = arith.constant 0 : index
    %c0_35 = arith.constant 0 : index
    %81 = vector.load %arg9[%c0_33, %c0_34, %c0_35] : memref<1x8x128xf32, #tpu.memory_space<vmem>>, vector<1x8x128xf32>
    tpu.vector_store %arg9[%c0_33, %c0_34, %c0_35], %80 {strides = array<i32>} : memref<1x8x128xf32, #tpu.memory_space<vmem>>, vector<1x8x128xf32>,
    %82 = vector.shape_cast %75 : vector<8x1xf32> to vector<1x8x1xf32>
    %cst_36 = arith.constant dense<0.000000e+00> : vector<1xf32>
    %83 = vector.multi_reduction <add>, %82, %cst_36 [1, 2] : vector<1x8x1xf32> to vector<1xf32>
    %84 = vector.shape_cast %83 : vector<1xf32> to vector<1x1x1xf32>
    %85 = vector.extract %84[0, 0, 0] : f32 from vector<1x1x1xf32>
    %86 = vector.broadcast %85 : f32 to vector<1x8x128xf32>
    %c0_37 = arith.constant 0 : index
    %c0_38 = arith.constant 0 : index
    %c0_39 = arith.constant 0 : index
    %87 = vector.load %arg10[%c0_37, %c0_38, %c0_39] : memref<1x8x128xf32, #tpu.memory_space<vmem>>, vector<1x8x128xf32>
    tpu.vector_store %arg10[%c0_37, %c0_38, %c0_39], %86 {strides = array<i32>} : memref<1x8x128xf32, #tpu.memory_space<vmem>>, vector<1x8x128xf32>,
    return
  }
  func.func @transform_0(%arg0: i32) -> (i32, i32) {
    %c0_i32 = arith.constant 0 : i32
    %c0_i32_0 = arith.constant 0 : i32
    return %arg0, %c0_i32 : i32, i32
  }
  func.func @transform_1(%arg0: i32) -> (i32, i32) {
    %c0_i32 = arith.constant 0 : i32
    %c0_i32_0 = arith.constant 0 : i32
    return %arg0, %c0_i32 : i32, i32
  }
  func.func @transform_2(%arg0: i32) -> (i32, i32) {
    %c0_i32 = arith.constant 0 : i32
    %c0_i32_0 = arith.constant 0 : i32
    return %arg0, %c0_i32 : i32, i32
  }
  func.func @transform_3(%arg0: i32) -> (i32, i32) {
    %c0_i32 = arith.constant 0 : i32
    %c0_i32_0 = arith.constant 0 : i32
    return %arg0, %c0_i32 : i32, i32
  }
  func.func @transform_4(%arg0: i32) -> (i32, i32) {
    %c0_i32 = arith.constant 0 : i32
    %c0_i32_0 = arith.constant 0 : i32
    return %arg0, %c0_i32 : i32, i32
  }
  func.func @transform_5(%arg0: i32) -> (i32, i32) {
    %c0_i32 = arith.constant 0 : i32
    %c0_i32_0 = arith.constant 0 : i32
    return %arg0, %c0_i32 : i32, i32
  }
  func.func @transform_6(%arg0: i32) -> (i32, i32) {
    %c0_i32 = arith.constant 0 : i32
    %c0_i32_0 = arith.constant 0 : i32
    return %arg0, %c0_i32 : i32, i32
  }
  func.func @transform_7(%arg0: i32) -> (i32, i32) {
    %c0_i32 = arith.constant 0 : i32
    %c0_i32_0 = arith.constant 0 : i32
    return %arg0, %c0_i32 : i32, i32
  }
  func.func @transform_8(%arg0: i32) -> (i32, i32, i32) {
    %c0_i32 = arith.constant 0 : i32
    %c0_i32_0 = arith.constant 0 : i32
    %c0_i32_1 = arith.constant 0 : i32
    return %arg0, %c0_i32, %c0_i32_0 : i32, i32, i32
  }
  func.func @transform_9(%arg0: i32) -> (i32, i32, i32) {
    %c0_i32 = arith.constant 0 : i32
    %c0_i32_0 = arith.constant 0 : i32
    %c0_i32_1 = arith.constant 0 : i32
    return %arg0, %c0_i32, %c0_i32_0 : i32, i32, i32
  }
}

</mosaic_0001>

<bundles_post_ra>
// kernel: tpu_custom_call.1
= control target key start
LH: loop header
LB: loop body
LE: loop exit
PB: predicated region body
PF: predicated region fallthrough
CT: control target
= control target key end

     0   :  { %15 = vsyncpa [#allocation3], 0  ;;  %s562_s0 = inlined_call_operand.vmem [shape: f32[8,32], index: 0, kind: input, shape index: {}]   ;;  %s563_s1 = inlined_call_operand.vmem [shape: f32[8,32], index: 1, kind: input, shape index: {}]   ;;  %s564_s2 = inlined_call_operand.hbm [shape: f32[8,16], index: 2, kind: input, shape index: {}]   ;;  %s565_s3 = inlined_call_operand.hbm [shape: f32[8,16], index: 3, kind: input, shape index: {}]   ;;  %s566_s4 = inlined_call_operand.hbm [shape: f32[8,32], index: 4, kind: input, shape index: {}]   ;;  %s567_s5 = inlined_call_operand.hbm [shape: f32[8,32], index: 5, kind: input, shape index: {}]   ;;  %s568_s6 = inlined_call_operand.vmem [shape: s32[8,1], index: 6, kind: input, shape index: {}]   ;;  %s569_s7 = inlined_call_operand.vmem [shape: s32[8,1], index: 7, kind: input, shape index: {}]   ;;  %s570_s8 = inlined_call_operand.hbm [shape: f32[1,8,128], index: 8, kind: output, shape index: {0}]   ;;  %s571_s9 = inlined_call_operand.hbm [shape: f32[1,8,128], index: 9, kind: output, shape index: {1}]  }
   0x1   :  { %16 = vsyncpa [#allocation6], 0 }
   0x2   :  { %17 = vsyncpa [#allocation9], 0 }
   0x3   :  { %18 = vsyncpa [#allocation4], 0  ;;  %s40_s11 = sshll.u32 %s565_s3, 4  ;;  %s41_s11 = int_to_ptr.hbm [resolvable:$true] %s40_s11 }
   0x4   :  { %19 = vsyncpa [#allocation12], 0  ;;  %s457_s12 = smov [#allocation5]   ;;  %s29_s16 = sshll.u32 %s564_s2, 4  ;;  %s30_s16 = int_to_ptr.hbm [resolvable:$true] %s29_s16 }
   0x5   :  { %s42_s13 = sshll.u32 %s457_s12, 4  ;;  %s458_s17 = smov [#allocation2]   ;;  %s43_s13 = int_to_ptr.vmem [resolvable:$true] %s42_s13 }
   0x6   :  { %45 = dma.hbm_to_vmem [thread:$0]  %s41_s11, 128, %s43_s13, [#allocation6]  }
   0x7   :  { %s31_s18 = sshll.u32 %s458_s17, 4  ;;  %s51_s21 = sshll.u32 %s566_s4, 4  ;;  %s32_s18 = int_to_ptr.vmem [resolvable:$true] %s31_s18  ;;  %s52_s21 = int_to_ptr.hbm [resolvable:$true] %s51_s21 }
   0x8   :  { %34 = dma.hbm_to_vmem [thread:$0]  %s30_s16, 128, %s32_s18, [#allocation3]  }
   0x9   :  { %s62_s23 = sshll.u32 %s567_s5, 4  ;;  %s459_s24 = smov [#allocation7]   ;;  %s63_s23 = int_to_ptr.hbm [resolvable:$true] %s62_s23 }
   0xa   :  { %s53_s25 = sshll.u32 %s459_s24, 4  ;;  %s460_s2 = smov [#allocation8]   ;;  %s54_s25 = int_to_ptr.vmem [resolvable:$true] %s53_s25 }
   0xb   :  { %56 = dma.hbm_to_vmem [thread:$0]  %s52_s21, 128, %s54_s25, [#allocation6]  }
   0xc   :  { %s64_s26 = sshll.u32 %s460_s2, 4  ;;  %s65_s26 = int_to_ptr.vmem [resolvable:$true] %s64_s26 }
   0xd   :  { %67 = dma.hbm_to_vmem [thread:$0]  %s63_s23, 128, %s65_s26, [#allocation9]  }
   0xe   :  { %447 = dma.done.wait [#allocation3], 128  }
   0xf   :  { %448 = vsyncadd [#allocation3], 4294967168 }
  0x10   :  { %449 = dma.done.wait [#allocation6], 256  }
  0x11   :  { %450 = vsyncadd [#allocation6], 4294967040 }
  0x12   :  { %451 = dma.done.wait [#allocation9], 128  }
  0x13   :  { %452 = vsyncadd [#allocation9], 4294967168  ;;  %v461_v0 = vmov 0   ;;  %vm170_vm0 = vcmask 130048   ;;  %v92_v1 = vld [vmem:[#allocation2] sm:$0xff]  ;;  %vm97_vm1 = vcmask 261120   ;;  %v182_v27 = vlaneseq }
  0x14   :  { %285 = vset.pattern.permute.xlu1 %v461_v0  ;;  %286 = vset.pattern.permute.xlu0 %v461_v0  ;;  %v94_v2 = vld [vmem:[%s568_s6] sm:$0xff]  ;;  %v171_v3 = vsel %vm170_vm0, %v92_v1, -inf  ;;  %v93_v7 = vld [vmem:[#allocation5] sm:$0xff]  ;;  %v91_v12 = vld [vmem:[#allocation8] sm:$0xff]  ;;  %s246_s12 = sshll.u32 %s570_s8, 4  ;;  %s463_s14 = smov [#allocation11]   ;;  %s247_s12 = int_to_ptr.hbm [resolvable:$true] %s246_s12 }
  0x15   :  { %185 = vperm.xlu1 %285, %v94_v2   ;;  %v88_v4 = vld [vmem:[%s562_s0] sm:$0xff]  ;;  %172 = vmax.xlane.f32.xlu0 %v171_v3  ;;  %v193_v11 = vsel %vm170_vm0, %v93_v7, -inf  ;;  %v116_v14 = vmul.f32 %v91_v12, %v91_v12  ;;  %v90_v16 = vld [vmem:[#allocation7] sm:$0xff]  ;;  %v183_v30 = vand.u32 127, %v182_v27  ;;  %s462_s0 = smov [#allocation10]   ;;  %s255_s15 = sshll.u32 %s463_s14, 4  ;;  %s256_s15 = int_to_ptr.vmem [resolvable:$true] %s255_s15 }
  0x16   :  { %v101_v5 = vmul.f32 %v88_v4, %v88_v4  ;;  %v89_v6 = vld [vmem:[%s563_s1] sm:$0xff]  ;;  %v152_v17 = vmul.f32 %v90_v16, %v90_v16  ;;  %v96_v28 = vmul.f32 %v91_v12, %v88_v4  ;;  %s244_s1 = sshll.u32 %s462_s0, 4  ;;  %s257_s18 = sshll.u32 %s571_s9, 4  ;;  %s245_s1 = int_to_ptr.vmem [resolvable:$true] %s244_s1  ;;  %s258_s18 = int_to_ptr.hbm [resolvable:$true] %s257_s18 }
  0x17   :  { %v95_v9 = vld [vmem:[%s569_s7] sm:$0xff]  ;;  %v137_v10 = vmul.f32 %v89_v6, %v89_v6  ;;  %v117_v15 = vsel %vm97_vm1, %v116_v14, 0.0  ;;  %v133_v34 = vmul.f32 %v90_v16, %v89_v6 }
  0x18   :  { %v102_v8 = vsel %vm97_vm1, %v101_v5, 0.0  ;;  %v153_v18 = vsel %vm97_vm1, %v152_v17, 0.0  ;;  %v98_v31 = vsel %vm97_vm1, %v96_v28, 0.0 }
  0x19   :  { %103 = vadd.xlane.f32.xlu2 %v102_v8  ;;  %v138_v13 = vsel %vm97_vm1, %v137_v10, 0.0  ;;  %v134_v36 = vsel %vm97_vm1, %v133_v34, 0.0 }
  0x1d   :  { %205 = vperm.xlu1 %285, %v95_v9   ;;  %194 = vmax.xlane.f32.xlu0 %v193_v11 }
  0x21   :  { %139 = vadd.xlane.f32.xlu2 %v138_v13 }
  0x25   :  { %118 = vadd.xlane.f32.xlu0 %v117_v15 }
  0x47   :  { %154 = vadd.xlane.f32.xlu1 %v153_v18 }
  0x87   :  { %v186_v29 = vpop.permute.xlu1 %185 }
  0x88   :  { %v173_v19 = vpop.xlane.xlu0 %172  ;;  %vm187_vm2 = vcmp.eq.s32.totalorder %v183_v30, %v186_v29 }
  0x89   :  { %v174_v20 = vsub.f32 %v92_v1, %v173_v19 }
  0x8b   :  { %v175_v21 = vmul.f32 1.442695, %v174_v20  ;;  %v188_v35 = vsel %vm187_vm2, %v174_v20, 0.0 }
  0x8c   :  { %v189_v38 = vsel %vm170_vm0, %v188_v35, 0.0  ;;  %v104_v41 = vpop.xlane.xlu2 %103 }
  0x8d   :  { %287 = vpow2.f32 %v175_v21  ;;  %vm111_vm4 = vweird.f32 %v104_v41 }
  0x8f   :  { %v206_v37 = vpop.permute.xlu1 %205 }
  0x90   :  { %v195_v22 = vpop.xlane.xlu0 %194  ;;  %vm207_vm3 = vcmp.eq.s32.totalorder %v183_v30, %v206_v37 }
  0x91   :  { %v196_v23 = vsub.f32 %v93_v7, %v195_v22 }
  0x93   :  { %v288_v24 = vpop.eup %287  ;;  %v197_v25 = vmul.f32 1.442695, %v196_v23  ;;  %v208_v39 = vsel %vm207_vm3, %v196_v23, 0.0 }
  0x94   :  { %v177_v26 = vsel %vm170_vm0, %v288_v24, 0.0  ;;  %v209_v40 = vsel %vm170_vm0, %v208_v39, 0.0  ;;  %v140_v42 = vpop.xlane.xlu2 %139 }
  0x95   :  { %289 = vpow2.f32 %v197_v25  ;;  %178 = vadd.xlane.f32.xlu2 %v177_v26  ;;  %vm147_vm6 = vweird.f32 %v140_v42 }
  0x96   :  { %291 = vrsqrt.f32 %v104_v41 }
  0x97   :  { %293 = vrsqrt.f32 %v140_v42 }
  0x98   :  { %v119_v43 = vpop.xlane.xlu0 %118 }
  0x99   :  { %295 = vrsqrt.f32 %v119_v43  ;;  %vm126_vm9 = vweird.f32 %v119_v43 }
  0x9b   :  { %v290_v32 = vpop.eup %289 }
  0x9c   :  { %v199_v33 = vsel %vm170_vm0, %v290_v32, 0.0  ;;  %v292_v45 = vpop.eup %291  ;;  %vm214_vm0 = vcmask 7168  }
  0x9d   :  { %200 = vadd.xlane.f32.xlu0 %v199_v33  ;;  %99 = vadd.xlane.f32.xlu2 %v98_v31  ;;  %v294_v46 = vpop.eup %293  ;;  %v106_v48 = vmul.f32 %v292_v45, %v104_v41  ;;  %vm112_vm5 = vweird.f32 %v292_v45 }
  0x9e   :  { %v142_v50 = vmul.f32 %v294_v46, %v140_v42  ;;  %vm148_vm7 = vweird.f32 %v294_v46  ;;  %vm550_vm8 = vmor %vm111_vm4, %vm112_vm5 }
  0x9f   :  { %v296_v47 = vpop.eup %295  ;;  %v107_v51 = vmul.f32 %v292_v45, %v106_v48  ;;  %vm149_vm13 = vmor %vm147_vm6, %vm148_vm7 }
  0xa0   :  { %v121_v52 = vmul.f32 %v296_v47, %v119_v43  ;;  %v143_v54 = vmul.f32 %v294_v46, %v142_v50  ;;  %vm127_vm10 = vweird.f32 %v296_v47 }
  0xa1   :  { %v108_v55 = vmul.f32 0.5, %v107_v51  ;;  %vm128_vm14 = vmor %vm126_vm9, %vm127_vm10 }
  0xa2   :  { %v122_v56 = vmul.f32 %v296_v47, %v121_v52  ;;  %v144_v58 = vmul.f32 0.5, %v143_v54 }
  0xa3   :  { %v109_v59 = vsub.f32 1.5, %v108_v55 }
  0xa4   :  { %v123_v60 = vmul.f32 0.5, %v122_v56  ;;  %v145_v63 = vsub.f32 1.5, %v144_v58 }
  0xa5   :  { %135 = vadd.xlane.f32.xlu0 %v134_v36  ;;  %190 = vadd.xlane.f32.xlu2 %v189_v38  ;;  %v110_v2 = vmul.f32 %v292_v45, %v109_v59 }
  0xa6   :  { %v124_v0 = vsub.f32 1.5, %v123_v60  ;;  %v146_v5 = vmul.f32 %v294_v46, %v145_v63 }
  0xa7   :  { %v114_v8 = vsel %vm550_vm8, %v292_v45, %v110_v2 }
  0xa8   :  { %v125_v6 = vmul.f32 %v296_v47, %v124_v0  ;;  %v150_v10 = vsel %vm149_vm13, %v294_v46, %v146_v5  ;;  %v115_v11 = vmin.f32 %v114_v8, 1e+08 }
  0xa9   :  { %v151_v15 = vmin.f32 %v150_v10, 1e+08 }
  0xaa   :  { %v129_v12 = vsel %vm128_vm14, %v296_v47, %v125_v6 }
  0xab   :  { %v130_v17 = vmin.f32 %v129_v12, 1e+08 }
  0xad   :  { %210 = vadd.xlane.f32.xlu0 %v209_v40 }
  0xba   :  { %v155_v44 = vpop.xlane.xlu1 %154 }
  0xbb   :  { %297 = vrsqrt.f32 %v155_v44  ;;  %vm162_vm11 = vweird.f32 %v155_v44 }
  0xc1   :  { %v298_v49 = vpop.eup %297 }
  0xc2   :  { %v157_v53 = vmul.f32 %v298_v49, %v155_v44  ;;  %vm163_vm12 = vweird.f32 %v298_v49 }
  0xc3   :  { %vm164_vm15 = vmor %vm162_vm11, %vm163_vm12 }
  0xc4   :  { %v158_v57 = vmul.f32 %v298_v49, %v157_v53 }
  0xc6   :  { %v159_v61 = vmul.f32 0.5, %v158_v57 }
  0xc8   :  { %v160_v1 = vsub.f32 1.5, %v159_v61 }
  0xca   :  { %v161_v7 = vmul.f32 %v298_v49, %v160_v1 }
  0xcc   :  { %v165_v13 = vsel %vm164_vm15, %v298_v49, %v161_v7 }
  0xcd   :  { %v166_v18 = vmin.f32 %v165_v13, 1e+08 }
 0x108   :  { %v179_v62 = vpop.xlane.xlu2 %178 }
 0x109   :  { %299 = vlog2.f32 %v179_v62 }
 0x10f   :  { %v300_v20 = vpop.eup %299 }
 0x110   :  { %v201_v4 = vpop.xlane.xlu0 %200  ;;  %v100_v9 = vpop.xlane.xlu2 %99  ;;  %v181_v26 = vmul.f32 0.6931472, %v300_v20 }
 0x111   :  { %301 = vlog2.f32 %v201_v4  ;;  %v131_v14 = vmul.f32 %v115_v11, %v100_v9 }
 0x113   :  { %v132_v21 = vmul.f32 %v131_v14, %v130_v17 }
 0x117   :  { %v302_v23 = vpop.eup %301 }
 0x118   :  { %v136_v16 = vpop.xlane.xlu0 %135  ;;  %v191_v25 = vpop.xlane.xlu2 %190  ;;  %v203_v27 = vmul.f32 0.6931472, %v302_v23 }
 0x119   :  { %v167_v19 = vmul.f32 %v151_v15, %v136_v16  ;;  %v192_v30 = vsub.f32 %v181_v26, %v191_v25 }
 0x11b   :  { %v168_v22 = vmul.f32 %v167_v19, %v166_v18 }
 0x11d   :  { %v169_v24 = vadd.f32 %v168_v22, %v132_v21 }
 0x11f   :  { %v215_v28 = vsel %vm214_vm0, %v169_v24, 0.0 }
 0x120   :  { %v211_v29 = vpop.xlane.xlu0 %210  ;;  %216 = vadd.xlane.f32.xlu2 %v215_v28 }
 0x121   :  { %v212_v31 = vsub.f32 %v203_v27, %v211_v29 }
 0x123   :  { %v213_v32 = vadd.f32 %v212_v31, %v192_v30 }
 0x125   :  { %v227_v33 = vsel %vm214_vm0, %v213_v32, 0.0 }
 0x126   :  { %228 = vadd.xlane.f32.xlu0 %v227_v33 }
 0x193   :  { %v217_v34 = vpop.xlane.xlu2 %216 }
 0x194   :  { %v218_v35 = vrot.slane %v217_v34, 4 }
 0x196   :  { %v219_v36 = vadd.f32 %v218_v35, %v217_v34 }
 0x198   :  { %v220_v37 = vrot.slane %v219_v36, 2 }
 0x199   :  { %v229_v38 = vpop.xlane.xlu0 %228 }
 0x19a   :  { %v230_v39 = vrot.slane %v229_v38, 4  ;;  %v221_v40 = vadd.f32 %v220_v37, %v219_v36 }
 0x19c   :  { %v231_v41 = vadd.f32 %v230_v39, %v229_v38  ;;  %v222_v42 = vrot.slane %v221_v40, 1 }
 0x19e   :  { %v232_v43 = vrot.slane %v231_v41, 2  ;;  %v223_v44 = vadd.f32 %v222_v42, %v221_v40 }
 0x1a0   :  { %v233_v45 = vadd.f32 %v232_v43, %v231_v41  ;;  %274 = vpush %v223_v44 }
 0x1a2   :  { %v234_v46 = vrot.slane %v233_v45, 1 }
 0x1a4   :  { %v235_v47 = vadd.f32 %v234_v46, %v233_v45 }
 0x1a6   :  { %276 = vpush %v235_v47 }
 0x1d1   :  { %s275_s13 = spop %274 }
 0x1d2   :  { %v225_v48 = vstv %s275_s13 }
 0x1d3   :  { %226 = vst [vmem:[#allocation10] sm:$0xff] %v225_v48 }
 0x1d4   :  { %249 = dma.vmem_to_hbm [thread:$0]  %s245_s1, 128, %s247_s12, [#allocation4]  }
 0x1d7   :  { %s277_s19 = spop %276 }
 0x1d8   :  { %v237_v49 = vstv %s277_s19 }
 0x1d9   :  { %238 = vst [vmem:[#allocation11] sm:$0xff] %v237_v49 }
 0x1da   :  { %260 = dma.vmem_to_hbm [thread:$0]  %s256_s15, 128, %s258_s18, [#allocation12]  }
 0x1db   :  { %453 = dma.done.wait [#allocation4], 128  }
 0x1dc   :  { %454 = vsyncadd [#allocation4], 4294967168 }
 0x1dd   :  { %455 = dma.done.wait [#allocation12], 128  }
 0x1de   :  { %456 = vsyncadd [#allocation12], 4294967168 }
 0x1df   :  { %269 = vsyncpa [#allocation3], 1 }
 0x1e0   :  { %270 = vsyncpa [#allocation6], 1 }
 0x1e1   :  { %271 = vsyncpa [#allocation9], 1 }
 0x1e2   :  { %272 = vsyncpa [#allocation4], 1 }
 0x1e3   :  { %273 = vsyncpa [#allocation12], 1 }

</bundles_post_ra>
